<compile_context>
chip_gen: v5e
topology: v5e:2x2
jax: 0.10.0
libtpu: 0.0.40
codegen_flags: <defaults>
</compile_context>

<pallas_src>
import jax
import jax.numpy as jnp
from jax import lax
from jax.experimental import pallas as pl
from jax.experimental.pallas import tpu as pltpu


# ----------------------------- hyper-parameters ------------------------------
INPUT_DIM = 8          # node feature dim
DIM_1 = 32             # mlp_1 width
F_HIDDEN_DIM = 16
F_OUTPUT_DIM = 16
T_HIDDEN_DIM = 16
T_OUTPUT_DIM = 8
N_SUBGRAPHS = 4        # H: number of learnable hidden graphs
SIZE_SUBGRAPHS = 5     # S: nodes per hidden graph
HS = N_SUBGRAPHS * SIZE_SUBGRAPHS
MAX_STEP = 3
NORMALIZE = True

N_GRAPHS = 4
NODES_PER_GRAPH = 6
N_NODES = N_GRAPHS * NODES_PER_GRAPH            # 24 nodes per graph-batch

N_BATCHES = 8                                   # independent graph-batches total
NUM_BLOCKS = 2                                  # grid steps (2 -> both TCs on v7x)
GB_PER_BLOCK = N_BATCHES // NUM_BLOCKS          # graph-batches fused per grid step
NB_NODES = GB_PER_BLOCK * N_NODES               # 96  (lane axis of every matmul)
NB_GRAPHS = GB_PER_BLOCK * N_GRAPHS             # 16  (output rows per grid step)

OUT_DIM = 2
OUT_LANES = 128                                 # lane-dense padded output width

# readout scalings applied in f32 inside the kernel (kept exact)
POOL_SCALE = 1.0 / NODES_PER_GRAPH              # average graph pooling
OHN_SCALE = (1.0 / NODES_PER_GRAPH) if NORMALIZE else 1.0


# ---------------------- packed parameter slab layouts -------------------------
def _build_layout(entries, align):
    layout, row = {}, 0
    for name, nr, nc in entries:
        layout[name] = (row, nr, nc)
        row += ((nr + align - 1) // align) * align
    return layout, row


# bf16 slab: every MXU operand, pre-cast host-side (16-row aligned: bf16 tile)
_W_ENTRIES = [
    ("w1t", F_HIDDEN_DIM, INPUT_DIM),           # w1^T (feature branch, transposed)
    ("w2t", F_OUTPUT_DIM, F_HIDDEN_DIM),        # w2^T
    ("z0", HS, T_HIDDEN_DIM),
    ("ahbd", HS, HS),                           # block-diag hidden-graph adjacency
    ("w_all", MAX_STEP * T_OUTPUT_DIM, HS),     # per-step wfc1_s^T @ pmat, stacked
    ("wm1_f", F_OUTPUT_DIM, DIM_1),
    ("wm1_t", T_OUTPUT_DIM, DIM_1),
    ("wm2_pad", DIM_1, OUT_LANES),
]
_WLAYOUT, W_ROWS = _build_layout(_W_ENTRIES, 16)

# f32 slab: elementwise-only params (8-row aligned: f32 tile)
_P_ENTRIES = [
    ("wfc_col", T_HIDDEN_DIM, 1),
    ("bfc_col", T_HIDDEN_DIM, 1),
    ("b1_col", F_HIDDEN_DIM, 1),
    ("b2_col", F_OUTPUT_DIM, 1),
    ("bfc1", 1, T_OUTPUT_DIM),
    ("bm1", 1, DIM_1),
    ("bm2_pad", 1, OUT_LANES),
]
_PLAYOUT, P_ROWS = _build_layout(_P_ENTRIES, 8)


def _wslice(ref, name):
    r, nr, nc = _WLAYOUT[name]
    return ref[r:r + nr, :nc]


def _pslice(ref, name):
    r, nr, nc = _PLAYOUT[name]
    return ref[r:r + nr, :nc]


# --------------------------------- kernel ------------------------------------
def igad_kernel(adj_ref, featsT_ref, pool_t_ref, wslab_ref, pslab_ref, out_ref):
    f32, bf16 = jnp.float32, jnp.bfloat16

    adj = adj_ref[...]          # [Nb, Nb]  bf16, block-diag 0/1 (exact), symmetric
    fT = featsT_ref[...]        # [Din, Nb] bf16 (features transposed: N on lanes)
    pool_t = pool_t_ref[...]    # [Gb, Nb]  bf16 0/1 (onehot^T, block-diag) readout

    # bf16 MXU weights (pre-cast host-side, no per-step packing)
    w1t = _wslice(wslab_ref, "w1t")
    w2t = _wslice(wslab_ref, "w2t")
    z0 = _wslice(wslab_ref, "z0")
    ahbd = _wslice(wslab_ref, "ahbd")
    w_all = _wslice(wslab_ref, "w_all")
    wm1_f = _wslice(wslab_ref, "wm1_f")
    wm1_t = _wslice(wslab_ref, "wm1_t")
    wm2 = _wslice(wslab_ref, "wm2_pad")
    # f32 elementwise params
    wfc_col = _pslice(pslab_ref, "wfc_col")     # [Th, 1]
    bfc_col = _pslice(pslab_ref, "bfc_col")     # [Th, 1]
    b1_col = _pslice(pslab_ref, "b1_col")       # [Fh, 1]
    b2_col = _pslice(pslab_ref, "b2_col")       # [Fo, 1]
    bfc1 = _pslice(pslab_ref, "bfc1")           # [1, To]
    bm1 = _pslice(pslab_ref, "bm1")             # [1, dim1]
    bm2 = _pslice(pslab_ref, "bm2_pad")         # [1, 128]

    # ---------- feature branch: SEAG_features, kept transposed [*, Nb] -------
    hT = jnp.dot(fT, adj, preferred_element_type=f32)                         # [Din, Nb]
    hT = jnp.maximum(jnp.dot(w1t, hT.astype(bf16),
                             preferred_element_type=f32) + b1_col, 0.0)        # [Fh, Nb]
    hT = jnp.dot(hT.astype(bf16), adj, preferred_element_type=f32)             # [Fh, Nb]
    hT = jnp.dot(w2t, hT.astype(bf16), preferred_element_type=f32) + b2_col    # [Fo, Nb]
    # average readout: exact 0/1 bf16 operand, 1/num_nodes applied in f32
    out1 = lax.dot_general(pool_t, hT.astype(bf16), (((1,), (1,)), ((), ())),
                           preferred_element_type=f32) * POOL_SCALE            # [Gb, Fo]

    # ---------- topology branch: SEAG_topo (RW-GNN), kept as [*, Nb] ---------
    deg = jnp.sum(adj.astype(f32), axis=0, keepdims=True)                      # [1, Nb]
    xT = jax.nn.sigmoid(wfc_col * deg + bfc_col)                               # [Th, Nb]
    xT_bf = xT.astype(bf16)
    z_bf = z0                                                                  # [HS, Th]
    zx = jnp.dot(z_bf, xT_bf, preferred_element_type=f32)                      # [HS, Nb]

    u = None                                                                   # [To, Nb]
    zxs = zx
    for step in range(MAX_STEP):
        if step > 0:
            # random walk: x <- adj @ x  ==>  xT <- xT @ adj (adj symmetric)
            xT_bf = jnp.dot(xT_bf, adj, preferred_element_type=f32).astype(bf16)
            # walk on the learnable (block-diagonal) hidden graphs
            z_bf = jnp.dot(ahbd, z_bf, preferred_element_type=f32).astype(bf16)
            zxs = jnp.dot(z_bf, xT_bf, preferred_element_type=f32)
        t = zx * zxs                                                           # [HS, Nb] f32 (dropout = identity)
        # per-step hidden-graph pooling + fc folded host-side: W_s = wfc1_s^T @ pmat
        ws = w_all[step * T_OUTPUT_DIM:(step + 1) * T_OUTPUT_DIM, :]           # [To, HS]
        contrib = jnp.dot(ws, t.astype(bf16), preferred_element_type=f32)      # [To, Nb]
        u = contrib if u is None else u + contrib

    # single graph readout for all steps; bf16 MXU matmul, f32 accumulation
    out2 = jnp.maximum(
        lax.dot_general(pool_t, u.astype(bf16), (((1,), (1,)), ((), ())),
                        preferred_element_type=f32) * OHN_SCALE + bfc1, 0.0)   # [Gb, To]

    # ---------- head: concat-free cat + mlp_1 + relu + mlp_2 -----------------
    pre = (jnp.dot(out1.astype(bf16), wm1_f, preferred_element_type=f32)
           + jnp.dot(out2.astype(bf16), wm1_t, preferred_element_type=f32)
           + bm1)                                                              # [Gb, dim1]
    h1 = jnp.maximum(pre, 0.0)
    # lane-dense, (8,128)-aligned output: wm2/bm2 are host-padded to 128 lanes
    out_ref[...] = jnp.dot(h1.astype(bf16), wm2, preferred_element_type=f32) + bm2


# --------------------------------- wrapper ------------------------------------
@jax.jit
def igad_forward(adj_bd, featsT, pool_t_bd, wslab, pslab):
    nb = adj_bd.shape[0]
    out_padded = pl.pallas_call(
        igad_kernel,
        out_shape=jax.ShapeDtypeStruct((nb, NB_GRAPHS, OUT_LANES), jnp.float32),
        grid=(nb,),
        in_specs=[
            pl.BlockSpec((None, NB_NODES, NB_NODES), lambda b: (b, 0, 0)),
            pl.BlockSpec((None, INPUT_DIM, NB_NODES), lambda b: (b, 0, 0)),
            pl.BlockSpec((NB_GRAPHS, NB_NODES), lambda b: (0, 0)),   # constant
            pl.BlockSpec((W_ROWS, OUT_LANES), lambda b: (0, 0)),     # constant
            pl.BlockSpec((P_ROWS, OUT_LANES), lambda b: (0, 0)),     # constant
        ],
        out_specs=pl.BlockSpec((None, NB_GRAPHS, OUT_LANES), lambda b: (b, 0, 0)),
        compiler_params=pltpu.CompilerParams(dimension_semantics=("parallel",)),
    )(adj_bd, featsT, pool_t_bd, wslab, pslab)
    out = out_padded[:, :, :OUT_DIM]                          # [nb, Gb, 2]
    # rows inside a block are graph-batch-major -> unfold back to [B, G, 2]
    return out.reshape(nb * GB_PER_BLOCK, N_GRAPHS, OUT_DIM)


# ----------------------------- params / inputs --------------------------------
def make_params():
    H, S, Th = N_SUBGRAPHS, SIZE_SUBGRAPHS, T_HIDDEN_DIM
    ks = jax.random.split(jax.random.PRNGKey(42), 16)

    def lin(k, fan_in, fan_out):
        return jax.random.normal(k, (fan_in, fan_out), jnp.float32) / jnp.sqrt(fan_in)

    params = {
        "w1": lin(ks[0], INPUT_DIM, F_HIDDEN_DIM),
        "b1": jnp.zeros((1, F_HIDDEN_DIM), jnp.float32),
        "w2": lin(ks[1], F_HIDDEN_DIM, F_OUTPUT_DIM),
        "b2": jnp.zeros((1, F_OUTPUT_DIM), jnp.float32),
        "wfc": lin(ks[2], 1, Th),
        "bfc": jnp.zeros((1, Th), jnp.float32),
        "z0": jax.random.normal(ks[3], (H * S, Th), jnp.float32) * 0.1,
        "wfc1": lin(ks[4], H * MAX_STEP, T_OUTPUT_DIM),
        "bfc1": jnp.zeros((1, T_OUTPUT_DIM), jnp.float32),
        "wm1": lin(ks[5], F_OUTPUT_DIM + T_OUTPUT_DIM, DIM_1),
        "bm1": jnp.zeros((1, DIM_1), jnp.float32),
        "wm2": lin(ks[6], DIM_1, 2),
        "bm2": jnp.zeros((1, 2), jnp.float32),
    }

    # learnable hidden-graph adjacencies: upper-triangular -> symmetric, relu
    n_tri = (S * (S - 1)) // 2
    adj_hidden = jax.nn.relu(jax.random.normal(ks[7], (H, n_tri), jnp.float32))
    iu = jnp.triu_indices(S, k=1)
    ahn = jnp.zeros((H, S, S), jnp.float32)
    ahn = ahn.at[:, iu[0], iu[1]].set(adj_hidden)
    ahn = ahn + jnp.transpose(ahn, (0, 2, 1))
    # block-diagonal [H*S, H*S] so the hidden-graph walk is one 2-D matmul
    params["ahbd"] = jax.scipy.linalg.block_diag(*[ahn[h] for h in range(H)])
    # pooling matrix summing the S rows of each hidden graph: [H, H*S]
    params["pmat"] = jnp.kron(jnp.eye(H, dtype=jnp.float32),
                              jnp.ones((1, S), jnp.float32))
    return params


def pack_params(params):
    """Pack parameters into a bf16 MXU-weight slab and a small f32 scalar slab."""
    H = N_SUBGRAPHS
    # fold per-step hidden-graph pooling + wfc1 linear: W_s = wfc1_s^T @ pmat
    w_all = jnp.concatenate(
        [params["wfc1"][s * H:(s + 1) * H, :].T @ params["pmat"]
         for s in range(MAX_STEP)], axis=0)                       # [MAX_STEP*To, H*S]
    wm2_pad = jnp.zeros((DIM_1, OUT_LANES), jnp.float32).at[:, :OUT_DIM].set(params["wm2"])
    bm2_pad = jnp.zeros((1, OUT_LANES), jnp.float32).at[:, :OUT_DIM].set(params["bm2"])

    wvals = {
        "w1t": params["w1"].T, "w2t": params["w2"].T,
        "z0": params["z0"], "ahbd": params["ahbd"], "w_all": w_all,
        "wm1_f": params["wm1"][:F_OUTPUT_DIM, :],
        "wm1_t": params["wm1"][F_OUTPUT_DIM:, :],
        "wm2_pad": wm2_pad,
    }
    wslab = jnp.zeros((W_ROWS, OUT_LANES), jnp.bfloat16)
    for name, val in wvals.items():
        r, nr, nc = _WLAYOUT[name]
        wslab = wslab.at[r:r + nr, :nc].set(val.astype(jnp.bfloat16))

    pvals = {
        "wfc_col": params["wfc"].T, "bfc_col": params["bfc"].T,
        "b1_col": params["b1"].T, "b2_col": params["b2"].T,
        "bfc1": params["bfc1"], "bm1": params["bm1"], "bm2_pad": bm2_pad,
    }
    pslab = jnp.zeros((P_ROWS, OUT_LANES), jnp.float32)
    for name, val in pvals.items():
        r, nr, nc = _PLAYOUT[name]
        pslab = pslab.at[r:r + nr, :nc].set(val.astype(jnp.float32))
    return wslab, pslab


def make_inputs(n_batches):
    key = jax.random.PRNGKey(0)
    adj_list, feat_list = [], []
    for b in range(n_batches):
        kb = jax.random.fold_in(key, b)
        k_adj, k_feat = jax.random.split(kb)
        adj = jnp.zeros((N_NODES, N_NODES), jnp.float32)
        sub_keys = jax.random.split(k_adj, N_GRAPHS)
        for g in range(N_GRAPHS):
            a = (jax.random.uniform(sub_keys[g],
                                    (NODES_PER_GRAPH, NODES_PER_GRAPH)) > 0.5)
            a = a.astype(jnp.float32)
            a = jnp.triu(a, k=1)
            a = a + a.T                                   # symmetric (undirected)
            s = g * NODES_PER_GRAPH
            adj = adj.at[s:s + NODES_PER_GRAPH, s:s + NODES_PER_GRAPH].set(a)
        adj_list.append(adj)
        feat_list.append(jax.random.normal(k_feat, (N_NODES, INPUT_DIM), jnp.float32))

    # fuse GB_PER_BLOCK graph-batches per grid step via block-diagonal batching
    adj_bd, featsT = [], []
    for c in range(NUM_BLOCKS):
        grp = adj_list[c * GB_PER_BLOCK:(c + 1) * GB_PER_BLOCK]
        adj_bd.append(jax.scipy.linalg.block_diag(*grp))                       # [Nb, Nb]
        fgrp = jnp.concatenate(feat_list[c * GB_PER_BLOCK:(c + 1) * GB_PER_BLOCK], axis=0)
        featsT.append(fgrp.T)                                                  # [Din, Nb]
    adj_bd = jnp.stack(adj_bd)                                                 # [NUM_BLOCKS, Nb, Nb]
    featsT = jnp.stack(featsT)                                                 # [NUM_BLOCKS, Din, Nb]

    # block-diagonal 0/1 readout (identical for every block -> single 2D constant);
    # the 1/num_nodes scalings are applied in f32 inside the kernel (exact bf16 operand)
    graph_indicator = jnp.repeat(jnp.arange(N_GRAPHS), NODES_PER_GRAPH)        # [N]
    onehot_t = jax.nn.one_hot(graph_indicator, N_GRAPHS, dtype=jnp.float32).T  # [G, N]
    pool_t_bd = jax.scipy.linalg.block_diag(*([onehot_t] * GB_PER_BLOCK))      # [Gb, Nb]

    # host casts: MXU operands go to bf16 (adjacency / onehot are 0/1 -> exact)
    return (adj_bd.astype(jnp.bfloat16), featsT.astype(jnp.bfloat16),
            pool_t_bd.astype(jnp.bfloat16))


if __name__ == "__main__":
    adj_bd, featsT, pool_t_bd = make_inputs(N_BATCHES)
    params = make_params()
    wslab, pslab = pack_params(params)
    out = igad_forward(adj_bd, featsT, pool_t_bd, wslab, pslab)
    out = jax.block_until_ready(out)
    assert out.shape == (N_BATCHES, N_GRAPHS, OUT_DIM) and out.dtype == jnp.float32
    assert bool(jnp.all(jnp.isfinite(out)))
    print("KERNEL_OK")
</pallas_src>

<mosaic_0001>
module attributes {stable_mosaic.version = 11 : i64} {
  func.func @igad_kernel(%arg0: i32, %arg1: memref<1x96x96xbf16, #tpu.memory_space<vmem>>, %arg2: memref<1x8x96xbf16, #tpu.memory_space<vmem>>, %arg3: memref<16x96xbf16, #tpu.memory_space<vmem>>, %arg4: memref<192x128xbf16, #tpu.memory_space<vmem>>, %arg5: memref<88x128xf32, #tpu.memory_space<vmem>>, %arg6: memref<1x16x128xf32, #tpu.memory_space<vmem>>) attributes {dimension_semantics = [#tpu.dimension_semantics<parallel>], iteration_bounds = array<i64: 2>, scalar_prefetch = 0 : i64, scratch_operands = 0 : i64, tpu.core_type = #tpu.core_type<tc>, window_params = [{transform_indices = @transform_0, window_bounds = array<i64: 1, 96, 96>}, {transform_indices = @transform_1, window_bounds = array<i64: 1, 8, 96>}, {pipeline_mode = #tpu.pipeline_mode<synchronous>, transform_indices = @transform_2, window_bounds = array<i64: 16, 96>}, {pipeline_mode = #tpu.pipeline_mode<synchronous>, transform_indices = @transform_3, window_bounds = array<i64: 192, 128>}, {pipeline_mode = #tpu.pipeline_mode<synchronous>, transform_indices = @transform_4, window_bounds = array<i64: 88, 128>}, {transform_indices = @transform_5, window_bounds = array<i64: 1, 16, 128>}]} {
    %c0 = arith.constant 0 : index
    %c0_0 = arith.constant 0 : index
    %c0_1 = arith.constant 0 : index
    %0 = vector.load %arg1[%c0, %c0_0, %c0_1] : memref<1x96x96xbf16, #tpu.memory_space<vmem>>, vector<1x96x96xbf16>
    %1 = vector.shape_cast %0 : vector<1x96x96xbf16> to vector<96x96xbf16>
    %c0_2 = arith.constant 0 : index
    %c0_3 = arith.constant 0 : index
    %c0_4 = arith.constant 0 : index
    %2 = vector.load %arg2[%c0_2, %c0_3, %c0_4] : memref<1x8x96xbf16, #tpu.memory_space<vmem>>, vector<1x8x96xbf16>
    %3 = vector.shape_cast %2 : vector<1x8x96xbf16> to vector<8x96xbf16>
    %c0_5 = arith.constant 0 : index
    %c0_6 = arith.constant 0 : index
    %4 = vector.load %arg3[%c0_5, %c0_6] : memref<16x96xbf16, #tpu.memory_space<vmem>>, vector<16x96xbf16>
    %c0_7 = arith.constant 0 : index
    %c0_8 = arith.constant 0 : index
    %5 = vector.load %arg4[%c0_7, %c0_8] : memref<192x128xbf16, #tpu.memory_space<vmem>>, vector<16x8xbf16>
    %c16 = arith.constant 16 : index
    %c0_9 = arith.constant 0 : index
    %6 = vector.load %arg4[%c16, %c0_9] : memref<192x128xbf16, #tpu.memory_space<vmem>>, vector<16x16xbf16>
    %c32 = arith.constant 32 : index
    %c0_10 = arith.constant 0 : index
    %7 = vector.load %arg4[%c32, %c0_10] : memref<192x128xbf16, #tpu.memory_space<vmem>>, vector<20x16xbf16>
    %c64 = arith.constant 64 : index
    %c0_11 = arith.constant 0 : index
    %8 = vector.load %arg4[%c64, %c0_11] : memref<192x128xbf16, #tpu.memory_space<vmem>>, vector<20x20xbf16>
    %c96 = arith.constant 96 : index
    %c0_12 = arith.constant 0 : index
    %9 = vector.load %arg4[%c96, %c0_12] : memref<192x128xbf16, #tpu.memory_space<vmem>>, vector<24x20xbf16>
    %c128 = arith.constant 128 : index
    %c0_13 = arith.constant 0 : index
    %10 = vector.load %arg4[%c128, %c0_13] : memref<192x128xbf16, #tpu.memory_space<vmem>>, vector<16x32xbf16>
    %c144 = arith.constant 144 : index
    %c0_14 = arith.constant 0 : index
    %11 = vector.load %arg4[%c144, %c0_14] : memref<192x128xbf16, #tpu.memory_space<vmem>>, vector<8x32xbf16>
    %c160 = arith.constant 160 : index
    %c0_15 = arith.constant 0 : index
    %12 = vector.load %arg4[%c160, %c0_15] : memref<192x128xbf16, #tpu.memory_space<vmem>>, vector<32x128xbf16>
    %c0_16 = arith.constant 0 : index
    %c0_17 = arith.constant 0 : index
    %13 = vector.load %arg5[%c0_16, %c0_17] : memref<88x128xf32, #tpu.memory_space<vmem>>, vector<16x1xf32>
    %c16_18 = arith.constant 16 : index
    %c0_19 = arith.constant 0 : index
    %14 = vector.load %arg5[%c16_18, %c0_19] : memref<88x128xf32, #tpu.memory_space<vmem>>, vector<16x1xf32>
    %c32_20 = arith.constant 32 : index
    %c0_21 = arith.constant 0 : index
    %15 = vector.load %arg5[%c32_20, %c0_21] : memref<88x128xf32, #tpu.memory_space<vmem>>, vector<16x1xf32>
    %c48 = arith.constant 48 : index
    %c0_22 = arith.constant 0 : index
    %16 = vector.load %arg5[%c48, %c0_22] : memref<88x128xf32, #tpu.memory_space<vmem>>, vector<16x1xf32>
    %c64_23 = arith.constant 64 : index
    %c0_24 = arith.constant 0 : index
    %17 = vector.load %arg5[%c64_23, %c0_24] : memref<88x128xf32, #tpu.memory_space<vmem>>, vector<1x8xf32>
    %c72 = arith.constant 72 : index
    %c0_25 = arith.constant 0 : index
    %18 = vector.load %arg5[%c72, %c0_25] : memref<88x128xf32, #tpu.memory_space<vmem>>, vector<1x32xf32>
    %c80 = arith.constant 80 : index
    %c0_26 = arith.constant 0 : index
    %19 = vector.load %arg5[%c80, %c0_26] : memref<88x128xf32, #tpu.memory_space<vmem>>, vector<1x128xf32>
    %cst = arith.constant dense<0.000000e+00> : vector<8x96xf32>
    %20 = tpu.matmul %3, %1, %cst {dimension_numbers = #tpu.dot_dimension_numbers<[1], [0], [0], [1], [0, 0, 1, 1], [], []>} : vector<8x96xbf16>, vector<96x96xbf16>, vector<8x96xf32> -> vector<8x96xf32>
    %21 = arith.truncf %20 : vector<8x96xf32> to vector<8x96xbf16>
    %cst_27 = arith.constant dense<0.000000e+00> : vector<16x96xf32>
    %22 = tpu.matmul %5, %21, %cst_27 {dimension_numbers = #tpu.dot_dimension_numbers<[1], [0], [0], [1], [0, 0, 1, 1], [], []>} : vector<16x8xbf16>, vector<8x96xbf16>, vector<16x96xf32> -> vector<16x96xf32>
    %23 = vector.broadcast %15 : vector<16x1xf32> to vector<16x96xf32>
    %24 = arith.addf %22, %23 : vector<16x96xf32>
    %cst_28 = arith.constant 0.000000e+00 : f32
    %25 = vector.broadcast %cst_28 : f32 to vector<16x96xf32>
    %26 = arith.maximumf %24, %25 : vector<16x96xf32>
    %27 = arith.truncf %26 : vector<16x96xf32> to vector<16x96xbf16>
    %cst_29 = arith.constant dense<0.000000e+00> : vector<16x96xf32>
    %28 = tpu.matmul %27, %1, %cst_29 {dimension_numbers = #tpu.dot_dimension_numbers<[1], [0], [0], [1], [0, 0, 1, 1], [], []>} : vector<16x96xbf16>, vector<96x96xbf16>, vector<16x96xf32> -> vector<16x96xf32>
    %29 = arith.truncf %28 : vector<16x96xf32> to vector<16x96xbf16>
    %cst_30 = arith.constant dense<0.000000e+00> : vector<16x96xf32>
    %30 = tpu.matmul %6, %29, %cst_30 {dimension_numbers = #tpu.dot_dimension_numbers<[1], [0], [0], [1], [0, 0, 1, 1], [], []>} : vector<16x16xbf16>, vector<16x96xbf16>, vector<16x96xf32> -> vector<16x96xf32>
    %31 = vector.broadcast %16 : vector<16x1xf32> to vector<16x96xf32>
    %32 = arith.addf %30, %31 : vector<16x96xf32>
    %33 = arith.truncf %32 : vector<16x96xf32> to vector<16x96xbf16>
    %cst_31 = arith.constant dense<0.000000e+00> : vector<16x16xf32>
    %34 = tpu.matmul %4, %33, %cst_31 {dimension_numbers = #tpu.dot_dimension_numbers<[1], [1], [0], [0], [0, 0, 1, 0], [], []>} : vector<16x96xbf16>, vector<16x96xbf16>, vector<16x16xf32> -> vector<16x16xf32>
    %cst_32 = arith.constant 0.166666672 : f32
    %35 = vector.broadcast %cst_32 : f32 to vector<16x16xf32>
    %36 = arith.mulf %34, %35 : vector<16x16xf32>
    %37 = arith.extf %1 : vector<96x96xbf16> to vector<96x96xf32>
    %cst_33 = arith.constant dense<0.000000e+00> : vector<96xf32>
    %38 = vector.multi_reduction <add>, %37, %cst_33 [0] : vector<96x96xf32> to vector<96xf32>
    %39 = vector.shape_cast %38 : vector<96xf32> to vector<1x96xf32>
    %40 = vector.broadcast %13 : vector<16x1xf32> to vector<16x96xf32>
    %41 = vector.broadcast %39 : vector<1x96xf32> to vector<16x96xf32>
    %42 = arith.mulf %40, %41 : vector<16x96xf32>
    %43 = vector.broadcast %14 : vector<16x1xf32> to vector<16x96xf32>
    %44 = arith.addf %42, %43 : vector<16x96xf32>
    %45 = arith.negf %44 : vector<16x96xf32>
    %46 = math.exp %45 : vector<16x96xf32>
    %cst_34 = arith.constant 1.000000e+00 : f32
    %47 = vector.broadcast %cst_34 : f32 to vector<16x96xf32>
    %48 = arith.addf %47, %46 : vector<16x96xf32>
    %49 = arith.divf %47, %48 : vector<16x96xf32>
    %50 = arith.truncf %49 : vector<16x96xf32> to vector<16x96xbf16>
    %cst_35 = arith.constant dense<0.000000e+00> : vector<20x96xf32>
    %51 = tpu.matmul %7, %50, %cst_35 {dimension_numbers = #tpu.dot_dimension_numbers<[1], [0], [0], [1], [0, 0, 1, 1], [], []>} : vector<20x16xbf16>, vector<16x96xbf16>, vector<20x96xf32> -> vector<20x96xf32>
    %52 = arith.mulf %51, %51 : vector<20x96xf32>
    %53 = vector.extract_strided_slice %9 {offsets = [0, 0], sizes = [8, 20], strides = [1, 1]} : vector<24x20xbf16> to vector<8x20xbf16>
    %54 = arith.truncf %52 : vector<20x96xf32> to vector<20x96xbf16>
    %cst_36 = arith.constant dense<0.000000e+00> : vector<8x96xf32>
    %55 = tpu.matmul %53, %54, %cst_36 {dimension_numbers = #tpu.dot_dimension_numbers<[1], [0], [0], [1], [0, 0, 1, 1], [], []>} : vector<8x20xbf16>, vector<20x96xbf16>, vector<8x96xf32> -> vector<8x96xf32>
    %cst_37 = arith.constant dense<0.000000e+00> : vector<16x96xf32>
    %56 = tpu.matmul %50, %1, %cst_37 {dimension_numbers = #tpu.dot_dimension_numbers<[1], [0], [0], [1], [0, 0, 1, 1], [], []>} : vector<16x96xbf16>, vector<96x96xbf16>, vector<16x96xf32> -> vector<16x96xf32>
    %57 = arith.truncf %56 : vector<16x96xf32> to vector<16x96xbf16>
    %cst_38 = arith.constant dense<0.000000e+00> : vector<20x16xf32>
    %58 = tpu.matmul %8, %7, %cst_38 {dimension_numbers = #tpu.dot_dimension_numbers<[1], [0], [0], [1], [0, 0, 1, 1], [], []>} : vector<20x20xbf16>, vector<20x16xbf16>, vector<20x16xf32> -> vector<20x16xf32>
    %59 = arith.truncf %58 : vector<20x16xf32> to vector<20x16xbf16>
    %cst_39 = arith.constant dense<0.000000e+00> : vector<20x96xf32>
    %60 = tpu.matmul %59, %57, %cst_39 {dimension_numbers = #tpu.dot_dimension_numbers<[1], [0], [0], [1], [0, 0, 1, 1], [], []>} : vector<20x16xbf16>, vector<16x96xbf16>, vector<20x96xf32> -> vector<20x96xf32>
    %61 = arith.mulf %51, %60 : vector<20x96xf32>
    %62 = vector.extract_strided_slice %9 {offsets = [8, 0], sizes = [8, 20], strides = [1, 1]} : vector<24x20xbf16> to vector<8x20xbf16>
    %63 = arith.truncf %61 : vector<20x96xf32> to vector<20x96xbf16>
    %cst_40 = arith.constant dense<0.000000e+00> : vector<8x96xf32>
    %64 = tpu.matmul %62, %63, %cst_40 {dimension_numbers = #tpu.dot_dimension_numbers<[1], [0], [0], [1], [0, 0, 1, 1], [], []>} : vector<8x20xbf16>, vector<20x96xbf16>, vector<8x96xf32> -> vector<8x96xf32>
    %65 = arith.addf %55, %64 : vector<8x96xf32>
    %cst_41 = arith.constant dense<0.000000e+00> : vector<16x96xf32>
    %66 = tpu.matmul %57, %1, %cst_41 {dimension_numbers = #tpu.dot_dimension_numbers<[1], [0], [0], [1], [0, 0, 1, 1], [], []>} : vector<16x96xbf16>, vector<96x96xbf16>, vector<16x96xf32> -> vector<16x96xf32>
    %67 = arith.truncf %66 : vector<16x96xf32> to vector<16x96xbf16>
    %cst_42 = arith.constant dense<0.000000e+00> : vector<20x16xf32>
    %68 = tpu.matmul %8, %59, %cst_42 {dimension_numbers = #tpu.dot_dimension_numbers<[1], [0], [0], [1], [0, 0, 1, 1], [], []>} : vector<20x20xbf16>, vector<20x16xbf16>, vector<20x16xf32> -> vector<20x16xf32>
    %69 = arith.truncf %68 : vector<20x16xf32> to vector<20x16xbf16>
    %cst_43 = arith.constant dense<0.000000e+00> : vector<20x96xf32>
    %70 = tpu.matmul %69, %67, %cst_43 {dimension_numbers = #tpu.dot_dimension_numbers<[1], [0], [0], [1], [0, 0, 1, 1], [], []>} : vector<20x16xbf16>, vector<16x96xbf16>, vector<20x96xf32> -> vector<20x96xf32>
    %71 = arith.mulf %51, %70 : vector<20x96xf32>
    %72 = vector.extract_strided_slice %9 {offsets = [16, 0], sizes = [8, 20], strides = [1, 1]} : vector<24x20xbf16> to vector<8x20xbf16>
    %73 = arith.truncf %71 : vector<20x96xf32> to vector<20x96xbf16>
    %cst_44 = arith.constant dense<0.000000e+00> : vector<8x96xf32>
    %74 = tpu.matmul %72, %73, %cst_44 {dimension_numbers = #tpu.dot_dimension_numbers<[1], [0], [0], [1], [0, 0, 1, 1], [], []>} : vector<8x20xbf16>, vector<20x96xbf16>, vector<8x96xf32> -> vector<8x96xf32>
    %75 = arith.addf %65, %74 : vector<8x96xf32>
    %76 = arith.truncf %75 : vector<8x96xf32> to vector<8x96xbf16>
    %cst_45 = arith.constant dense<0.000000e+00> : vector<16x8xf32>
    %77 = tpu.matmul %4, %76, %cst_45 {dimension_numbers = #tpu.dot_dimension_numbers<[1], [1], [0], [0], [0, 0, 1, 0], [], []>} : vector<16x96xbf16>, vector<8x96xbf16>, vector<16x8xf32> -> vector<16x8xf32>
    %cst_46 = arith.constant 0.166666672 : f32
    %78 = vector.broadcast %cst_46 : f32 to vector<16x8xf32>
    %79 = arith.mulf %77, %78 : vector<16x8xf32>
    %80 = vector.broadcast %17 : vector<1x8xf32> to vector<16x8xf32>
    %81 = arith.addf %79, %80 : vector<16x8xf32>
    %cst_47 = arith.constant 0.000000e+00 : f32
    %82 = vector.broadcast %cst_47 : f32 to vector<16x8xf32>
    %83 = arith.maximumf %81, %82 : vector<16x8xf32>
    %84 = arith.truncf %36 : vector<16x16xf32> to vector<16x16xbf16>
    %cst_48 = arith.constant dense<0.000000e+00> : vector<16x32xf32>
    %85 = tpu.matmul %84, %10, %cst_48 {dimension_numbers = #tpu.dot_dimension_numbers<[1], [0], [0], [1], [0, 0, 1, 1], [], []>} : vector<16x16xbf16>, vector<16x32xbf16>, vector<16x32xf32> -> vector<16x32xf32>
    %86 = arith.truncf %83 : vector<16x8xf32> to vector<16x8xbf16>
    %cst_49 = arith.constant dense<0.000000e+00> : vector<16x32xf32>
    %87 = tpu.matmul %86, %11, %cst_49 {dimension_numbers = #tpu.dot_dimension_numbers<[1], [0], [0], [1], [0, 0, 1, 1], [], []>} : vector<16x8xbf16>, vector<8x32xbf16>, vector<16x32xf32> -> vector<16x32xf32>
    %88 = arith.addf %85, %87 : vector<16x32xf32>
    %89 = vector.broadcast %18 : vector<1x32xf32> to vector<16x32xf32>
    %90 = arith.addf %88, %89 : vector<16x32xf32>
    %cst_50 = arith.constant 0.000000e+00 : f32
    %91 = vector.broadcast %cst_50 : f32 to vector<16x32xf32>
    %92 = arith.maximumf %90, %91 : vector<16x32xf32>
    %93 = arith.truncf %92 : vector<16x32xf32> to vector<16x32xbf16>
    %cst_51 = arith.constant dense<0.000000e+00> : vector<16x128xf32>
    %94 = tpu.matmul %93, %12, %cst_51 {dimension_numbers = #tpu.dot_dimension_numbers<[1], [0], [0], [1], [0, 0, 1, 1], [], []>} : vector<16x32xbf16>, vector<32x128xbf16>, vector<16x128xf32> -> vector<16x128xf32>
    %95 = vector.broadcast %19 : vector<1x128xf32> to vector<16x128xf32>
    %96 = arith.addf %94, %95 : vector<16x128xf32>
    %c0_52 = arith.constant 0 : index
    %c0_53 = arith.constant 0 : index
    %c0_54 = arith.constant 0 : index
    %97 = vector.load %arg6[%c0_52, %c0_53, %c0_54] : memref<1x16x128xf32, #tpu.memory_space<vmem>>, vector<1x16x128xf32>
    %98 = vector.shape_cast %97 : vector<1x16x128xf32> to vector<16x128xf32>
    %99 = vector.shape_cast %96 : vector<16x128xf32> to vector<1x16x128xf32>
    tpu.vector_store %arg6[%c0_52, %c0_53, %c0_54], %99 {strides = array<i32>} : memref<1x16x128xf32, #tpu.memory_space<vmem>>, vector<1x16x128xf32>,
    return
  }
  func.func @transform_0(%arg0: i32) -> (i32, i32, i32) {
    %c0_i32 = arith.constant 0 : i32
    %c0_i32_0 = arith.constant 0 : i32
    %c0_i32_1 = arith.constant 0 : i32
    return %arg0, %c0_i32, %c0_i32_0 : i32, i32, i32
  }
  func.func @transform_1(%arg0: i32) -> (i32, i32, i32) {
    %c0_i32 = arith.constant 0 : i32
    %c0_i32_0 = arith.constant 0 : i32
    %c0_i32_1 = arith.constant 0 : i32
    return %arg0, %c0_i32, %c0_i32_0 : i32, i32, i32
  }
  func.func @transform_2(%arg0: i32) -> (i32, i32) {
    %c0_i32 = arith.constant 0 : i32
    %c0_i32_0 = arith.constant 0 : i32
    %c0_i32_1 = arith.constant 0 : i32
    return %c0_i32, %c0_i32_0 : i32, i32
  }
  func.func @transform_3(%arg0: i32) -> (i32, i32) {
    %c0_i32 = arith.constant 0 : i32
    %c0_i32_0 = arith.constant 0 : i32
    %c0_i32_1 = arith.constant 0 : i32
    return %c0_i32, %c0_i32_0 : i32, i32
  }
  func.func @transform_4(%arg0: i32) -> (i32, i32) {
    %c0_i32 = arith.constant 0 : i32
    %c0_i32_0 = arith.constant 0 : i32
    %c0_i32_1 = arith.constant 0 : i32
    return %c0_i32, %c0_i32_0 : i32, i32
  }
  func.func @transform_5(%arg0: i32) -> (i32, i32, i32) {
    %c0_i32 = arith.constant 0 : i32
    %c0_i32_0 = arith.constant 0 : i32
    %c0_i32_1 = arith.constant 0 : i32
    return %arg0, %c0_i32, %c0_i32_0 : i32, i32, i32
  }
}

</mosaic_0001>

<bundles_post_ra>
// kernel: igad_forward.1
= control target key start
LH: loop header
LB: loop body
LE: loop exit
PB: predicated region body
PF: predicated region fallthrough
CT: control target
= control target key end

     0   :  { %s1853_s0 = inlined_call_operand.hbm [shape: bf16[2,96,96], index: 0, kind: input, shape index: {}]   ;;  %s1854_s1 = inlined_call_operand.hbm [shape: bf16[2,8,96], index: 1, kind: input, shape index: {}]   ;;  %s1855_s2 = inlined_call_operand.hbm [shape: bf16[16,96], index: 2, kind: input, shape index: {}]   ;;  %s1856_s3 = inlined_call_operand.hbm [shape: bf16[192,128], index: 3, kind: input, shape index: {}]   ;;  %s1857_s4 = inlined_call_operand.hbm [shape: f32[88,128], index: 4, kind: input, shape index: {}]   ;;  %s1858_s5 = inlined_call_operand.vmem [shape: f32[2,16,128], index: 5, kind: output, shape index: {}]  }
   0x1   :  { %1859 = sst [smem:[#allocation14_spill]] %s1853_s0 }
   0x2   :  { %1860 = sst [smem:[#allocation15_spill]] %s1855_s2 }
   0x3   :  { %10 = vsyncpa [#allocation3], 0 }
   0x4   :  { %12 = vsyncpa [#allocation3 + $0x1], 0 }
   0x5   :  { %13 = vsyncpa [#allocation5], 0 }
   0x6   :  { %15 = vsyncpa [#allocation5 + $0x1], 0 }
   0x7   :  { %16 = vsyncpa [#allocation8], 0  ;;  %s1584_s18 = smov 0   ;;  %s1586_s19 = smov 0  }
   0x8   :  { %s1588_s20 = smov 0   ;;  %s1590_s21 = smov 0  }
   0x9 LB: > { %s1603_s22 = sadd.s32 4294967295, %s1544_s21   ;;  %p42_p0 = scmp.ne.s32.totalorder %s1536_s19, %s1532_s18  ;;  %s1544_s21 = sphi %s1590_s21, %s1871_s21   ;;  %s1540_s20 = sphi %s1588_s20, %s1870_s20   ;;  %s1536_s19 = sphi %s1586_s19, %s1869_s19   ;;  %s1532_s18 = sphi %s1584_s18, %s1868_s18  }
   0xa   : > { %p43_p1 = scmp.eq.s32.totalorder %s1603_s22, 0  ;;  %p1137_p2 = scmp.ge.s32.totalorder %s1544_s21, 1 }
   0xb   : > { %p168_p3 = scmp.lt.s32.totalorder %s1544_s21, 3  ;;  %s1862_s2 = sld [smem:[#allocation15_spill]] }
   0xc   : > { %p1611_p4 = por %p43_p1, %p42_p0  ;;  %s1546_s28 = smov [#allocation6]  }
   0xd   : > { %p1618_p5 = pnand %p1137_p2, %p168_p3  ;;  %s181_s29 = sshll.u32 %s1546_s28, 4  ;;  %s182_s29 = int_to_ptr.vmem [resolvable:$true] %s181_s29 }
   0xe   : > { %s193_s8 = sshll.u32 %s1856_s3, 4  ;;  %s1547_s9 = smov 64   ;;  %s194_s8 = int_to_ptr.hbm [resolvable:$true] %s193_s8 }
   0xf   : > { %p1270_p6 = pneg %p1618_p5  ;;  %s1548_s10 = smov 4  }
  0x10   : > { %s1549_s11 = smov [#allocation7]   ;;  %s207_s15 = sshll.u32 %s1857_s4, 4  ;;  %s208_s15 = int_to_ptr.hbm [resolvable:$true] %s207_s15 }
  0x11   : > { %s179_s26 = sshll.u32 %s1862_s2, 4  ;;  %p1626_p7 = pnand %p1270_p6, %p43_p1  ;;  %s180_s26 = int_to_ptr.hbm [resolvable:$true] %s179_s26 }
  0x12   : > { %s195_s12 = sshll.u32 %s1549_s11, 4  ;;  %s1550_s16 = smov [#allocation9]   ;;  %s196_s12 = int_to_ptr.vmem [resolvable:$true] %s195_s12 }
  0x13   : > { %1273 = dma.hbm_to_vmem [thread:$0]  (!%p1626_p7), %s180_s26, 128, %s182_s29, [#allocation5], %s1547_s9, %s1547_s9, %s1548_s10  }
  0x14   : > { %1276 = dma.hbm_to_vmem [thread:$0]  (!%p1626_p7), %s194_s8, 1536, %s196_s12, [#allocation8], %s1547_s9, %s1547_s9, %s1548_s10  }
  0x15   : > { %s209_s17 = sshll.u32 %s1550_s16, 4  ;;  %s1551_s18 = smov 128   ;;  %s210_s17 = int_to_ptr.vmem [resolvable:$true] %s209_s17 }
  0x16   : > { %s1552_s24 = smov 8   ;;  %s1649_s25 = sadd.s32 1, %s1544_s21  }
  0x17   : > { %1279 = dma.hbm_to_vmem [thread:$0]  (!%p1626_p7), %s208_s15, 1408, %s210_s17, [#allocation8], %s1551_s18, %s1551_s18, %s1552_s24  }
  0x18   : > { %s26_s26 = ssub.s32 %s1544_s21, %s1649_s25  ;;  %s29_s28 = sadd.s32 1, %s1540_s20 }
  0x19   : > { %p27_p8 = scmp.eq.s32.totalorder %s26_s26, 0  ;;  %p36_p9 = scmp.ne.s32.totalorder %s1540_s20, %s1536_s19 }
  0x1a   : > { %p37_p10 = scmp.eq.s32.totalorder %s1544_s21, 0  ;;  %p1290_p11 = scmp.lt.s32.totalorder %s1544_s21, 2 }
  0x1b   : > { %s1659_s29 = scalar_select %p27_p8, %s1540_s20, %s29_s28  }
  0x1c   : > { %p38_p12 = por %p37_p10, %p36_p9  ;;  %s1662_s6 = sand.u32 1, %s1540_s20  }
  0x1d   : > { %s1251_s7 = smul.u32 48, %s1662_s6  ;;  %s1866_s0 = sld [smem:[#allocation14_spill]] }
  0x1e   : > { %s1252_s8 = smul.u32 48, %s1544_s21  ;;  %p1666_p13 = pnand %p1290_p11, %p38_p12 }
  0x1f   : > { %s227_s15 = scalar_lea.vmem [#allocation2], %s1251_s7  ;;  %s224_s18 = scalar_lea.sflag [#allocation3], %s1662_s6 }
  0x20   : > { %s235_s16 = sshll.u32 %s227_s15, 4  ;;  %p1442_p2 = pneg %p1666_p13  ;;  %s236_s16 = int_to_ptr.vmem [resolvable:$true] %s235_s16 }
  0x23   : > { %s232_s14 = scalar_lea.hbm %s1866_s0, %s1252_s8  ;;  %s1445_s8 = scalar_lea.hbm %s1866_s0, 96 }
  0x24   : > { %s233_s17 = sshll.u32 %s232_s14, 4  ;;  %s234_s17 = int_to_ptr.hbm [resolvable:$true] %s233_s17 }
  0x25   : > { %s1438_s24 = sshra.s32 %s234_s17, 4  ;;  %s1439_s24 = int_to_ptr.hbm [resolvable:$true] %s1438_s24 }
  0x26   : > { %s1440_s26 = scalar_lea.hbm %s1439_s24, 48  ;;  %p1446_p7 = scmp.lt.s32.totalorder %s1439_s24, %s1866_s0 }
  0x27   : > { %p1441_p0 = scmp.ne.s32.totalorder %s1439_s24, %s1440_s26  ;;  %p1447_p8 = scmp.lt.s32.totalorder %s1445_s8, %s1440_s26 }
  0x29   : > { %p1443_p3 = pnand %p1442_p2, %p1441_p0  ;;  %p1448_p9 = por %p1447_p8, %p1446_p7 }
  0x2b   : > { %p1444_p6 = pneg %p1443_p3 }
  0x2d   : > { %p1449_p10 = pnand %p1448_p9, %p1444_p6 }
  0x2f   : > { %1452 = shalt.err (!%p1449_p10)
}
  0x30   : > { %1283 = dma.hbm_to_vmem [thread:$0]  (!%p1666_p13), %s234_s17, 768, %s236_s16, %s224_s18, %s1547_s9, %s1547_s9, %s1548_s10  }
  0x31   : > { %s1143_s11 = sshll.u32 %s1662_s6, 2  ;;  %s1144_s13 = sshll.u32 %s1544_s21, 2 }
  0x32   : > { %s253_s24 = scalar_lea.hbm %s1854_s1, %s1144_s13  ;;  %s249_s26 = scalar_lea.vmem [#allocation4], %s1143_s11 }
  0x33   : > { %s257_s28 = sshll.u32 %s249_s26, 4  ;;  %s255_s8 = sshll.u32 %s253_s24, 4  ;;  %s258_s28 = int_to_ptr.vmem [resolvable:$true] %s257_s28  ;;  %s256_s8 = int_to_ptr.hbm [resolvable:$true] %s255_s8 }
  0x34   : > { %s1867_s7 = sand.u32 1, %s1544_s21   ;;  %s1468_s0 = sshra.s32 %s256_s8, 4  ;;  %s1469_s0 = int_to_ptr.hbm [resolvable:$true] %s1468_s0 }
  0x35   : > { %s246_s12 = scalar_lea.sflag [#allocation5], %s1867_s7  ;;  %s1470_s2 = scalar_lea.hbm %s1469_s0, 4 }
  0x36   : > { %p1471_p11 = scmp.ne.s32.totalorder %s1469_s0, %s1470_s2  ;;  %s1475_s6 = scalar_lea.hbm %s1854_s1, 8 }
  0x37   : > { %p1476_p3 = scmp.lt.s32.totalorder %s1469_s0, %s1854_s1  ;;  %p1477_p6 = scmp.lt.s32.totalorder %s1475_s6, %s1470_s2 }
  0x38   : > { %p1473_p12 = pnand %p1471_p11, %p1442_p2 }
  0x39   : > { %p1478_p7 = por %p1477_p6, %p1476_p3 }
  0x3a   : > { %p1474_p0 = pneg %p1473_p12 }
  0x3c   : > { %p1479_p8 = pnand %p1478_p7, %p1474_p0 }
  0x3e   : > { %1482 = shalt.err (!%p1479_p8)
}
  0x3f   : > { %1286 = dma.hbm_to_vmem [thread:$0]  (!%p1666_p13), %s256_s8, 64, %s258_s28, %s246_s12  }
  0x40   : > { %266 = sbr.rel (%p1618_p5) target bundleno = 1870 (0x74e), region = 40  ;;  %s268_s21 = sand.u32 (!%p1618_p5), 1, %s1536_s19  }
  0x41   : > { %s1253_s18 = smul.u32 (!%p1618_p5), 48, %s268_s21  ;;  %s269_s11 = scalar_lea.sflag (!%p1618_p5), [#allocation3], %s268_s21 }
  0x43   : > { %s1712_s13 = scalar_lea.vmem (!%p1618_p5), [#allocation2], %s1253_s18 }
  0x45   : > { %1515 = dma.done.wait (%p1611_p4), %s269_s11, 768  }
  0x46   : > { %1517 = vsyncadd (%p1611_p4), %s269_s11, 4294966528  ;;  %s278_s0 = sand.u32 1, %s1603_s22   ;;  %s1146_s2 = sshll.u32 %s268_s21, 2 }
  0x47   : > { %s279_s30 = scalar_lea.sflag [#allocation5], %s278_s0  ;;  %s282_s14 = scalar_lea.vmem [#allocation4], %s1146_s2 }
  0x48   : > { %1519 = dma.done.wait (%p1611_p4), %s279_s30, 64  }
  0x49   : > { %1521 = vsyncadd (%p1611_p4), %s279_s30, 4294967232 }
  0x4a   : > { %1523 = dma.done.wait (%p43_p1), [#allocation5], 128  }
  0x4b   : > { %1525 = vsyncadd (%p43_p1), [#allocation5], 4294967168 }
  0x4c   : > { %1527 = dma.done.wait (%p43_p1), [#allocation8], 2944  }
  0x4d   : > { %1529 = vsyncadd (%p43_p1), [#allocation8], 4294964352  ;;  %v1732_v0 = vld [vmem:[%s1712_s13 + $0x28] sm:$0xff]  ;;  %v1736_v1 = vld [vmem:[%s1712_s13 + $0x20] sm:$0xff]  ;;  %vm418_vm0 = vcmask 785408   ;;  %v1553_v7 = vmov 0  }
  0x4e   : > { %424 = vmatpush.bf16.msra.mxu0 %v1732_v0  ;;  %481 = vmatpush.bf16.msra.mxu2 %v1732_v0  ;;  %v1741_v2 = vld [vmem:[%s1712_s13 + $0x18] sm:$0xff]  ;;  %v1746_v3 = vld [vmem:[%s1712_s13 + $0x10] sm:$0xff]  ;;  %v1751_v4 = vld [vmem:[%s1712_s13 + $0x8] sm:$0xff]  ;;  %vm455_vm1 = vcmask 1043456   ;;  %vm451_vm2 = vcmask 64512   ;;  %vm509_vm3 = vcmask 130048  }
  0x4f   : > { %v1756_v5 = vld [vmem:[%s1712_s13] sm:$0xff]  ;;  %1334 = vset.pattern.permute.xlu0 %v1553_v7  ;;  %1335 = vset.pattern.permute.xlu1 %v1553_v7  ;;  %v376_v9 = vld [vmem:[#allocation9 + $0x28] sm:$0xff]  ;;  %v378_v27 = vld [vmem:[#allocation9 + $0x38] sm:$0xff]  ;;  %vm730_vm12 = vcmask 1041408   ;;  %vm723_vm13 = vcmask 162816   ;;  %vm998_vm14 = vcmask 261120  }
  0x50   : > { %v348_v6 = vld [vmem:[%s282_s14] sm:$0xf]  ;;  %v375_v8 = vld [vmem:[#allocation9 + $0x20] sm:$0xff]  ;;  %1336 = vset.pattern.permute.xlu2 %v1553_v7  ;;  %v372_v26 = vld [vmem:[#allocation9 + $0x8] sm:$0xff]  ;;  %p330_p1 = scmp.lt.s32.totalorder %s1603_s22, 1 }
  0x51   : > { %438 = vperm.xlu0 %1334, %v375_v8   ;;  %v377_v10 = vld [vmem:[#allocation9 + $0x30] sm:$0xff]  ;;  %v1244_v14 = vld [vmem:[#allocation7] sm:$0xff]  ;;  %v374_v29 = vld [vmem:[#allocation9 + $0x18] sm:$0xff] }
  0x52   : > { %425 = vmatpush.bf16.msra.mxu0 %v1736_v1  ;;  %482 = vmatpush.bf16.msra.mxu2 %v1736_v1  ;;  %v371_v25 = vld [vmem:[#allocation9] sm:$0xff]  ;;  %v373_v28 = vld [vmem:[#allocation9 + $0x10] sm:$0xff]  ;;  %v1245_v33 = vld [vmem:[#allocation7 + $0x8] sm:$0xff]  ;;  %s1873_s22 = smov (!%p330_p1, %s1603_s22), 1 }
  0x53   : > { %598 = vperm.xlu1 %1335, %v371_v25   ;;  %610 = vperm.xlu2 %1336, %v373_v28   ;;  %v336_v34 = vld [vmem:[%s1712_s13] sm:$0xff]   ;;  %v338_v35 = vld [vmem:[%s1712_s13 + $0x8] sm:$0xff]   ;;  %v340_v36 = vld [vmem:[%s1712_s13 + $0x10] sm:$0xff]   ;;  %s1236_s23 = sshll.u32 %s1873_s22, 4 }
  0x54   : > { %v555_v37 = vunpack.c.l.bf16 %v336_v34  ;;  %v556_v38 = vunpack.c.h.bf16 %v336_v34  ;;  %v557_v39 = vunpack.c.l.bf16 %v338_v35  ;;  %v558_v40 = vunpack.c.h.bf16 %v338_v35  ;;  %v342_v45 = vld [vmem:[%s1712_s13 + $0x18] sm:$0xff]   ;;  %v344_v52 = vld [vmem:[%s1712_s13 + $0x20] sm:$0xff]   ;;  %v346_v59 = vld [vmem:[%s1712_s13 + $0x28] sm:$0xff]   ;;  %s334_s24 = scalar_lea.vmem %s1858_s5, %s1236_s23 }
  0x55   : > { %v559_v41 = vunpack.c.l.bf16 %v340_v36  ;;  %v560_v47 = vunpack.c.h.bf16 %v340_v36  ;;  %v561_v50 = vunpack.c.l.bf16 %v342_v45  ;;  %v562_v54 = vunpack.c.h.bf16 %v342_v45 }
  0x56   : > { %426 = vmatpush.bf16.msra.mxu0 %v1741_v2  ;;  %483 = vmatpush.bf16.msra.mxu2 %v1741_v2  ;;  %v567_v42 = vsel %vm418_vm0, %v555_v37, 0.0  ;;  %v568_v43 = vsel %vm418_vm0, %v556_v38, 0.0  ;;  %v570_v44 = vsel %vm418_vm0, %v557_v39, 0.0  ;;  %v572_v48 = vsel %vm418_vm0, %v558_v40, 0.0 }
  0x57   : > { %v569_v46 = vadd.f32 %v568_v43, %v567_v42  ;;  %v574_v51 = vsel %vm418_vm0, %v559_v41, 0.0  ;;  %v576_v55 = vsel %vm418_vm0, %v560_v47, 0.0  ;;  %v563_v57 = vunpack.c.l.bf16 %v344_v52 }
  0x58   : > { %v578_v58 = vsel %vm418_vm0, %v561_v50, 0.0  ;;  %v564_v61 = vunpack.c.h.bf16 %v344_v52  ;;  %v580_v62 = vsel %vm418_vm0, %v562_v54, 0.0 }
  0x59   : > { %443 = vperm.xlu0 %1334, %v376_v9   ;;  %v571_v49 = vadd.f32 %v570_v44, %v569_v46  ;;  %v582_v7 = vsel %vm418_vm0, %v563_v57, 0.0  ;;  %v566_v9 = vunpack.c.h.bf16 %v346_v59 }
  0x5a   : > { %427 = vmatpush.bf16.msra.mxu0 %v1746_v3  ;;  %484 = vmatpush.bf16.msra.mxu2 %v1746_v3 }
  0x5b   : > { %603 = vperm.xlu1 %1335, %v372_v26   ;;  %615 = vperm.xlu2 %1336, %v374_v29   ;;  %v573_v53 = vadd.f32 %v572_v48, %v571_v49 }
  0x5d   : > { %v575_v56 = vadd.f32 %v574_v51, %v573_v53 }
  0x5e   : > { %428 = vmatpush.bf16.msra.mxu0 %v1751_v4  ;;  %485 = vmatpush.bf16.msra.mxu2 %v1751_v4 }
  0x5f   : > { %v577_v60 = vadd.f32 %v576_v55, %v575_v56 }
  0x61   : > { %496 = vperm.xlu0 %1334, %v377_v10   ;;  %v579_v63 = vadd.f32 %v578_v58, %v577_v60  ;;  %v584_v10 = vsel %vm418_vm0, %v564_v61, 0.0  ;;  %v357_v58 = vld [vmem:[#allocation7 + $0x18] sm:$0x3] }
  0x62   : > { %429 = vmatpush.bf16.msra.mxu0 %v1756_v5  ;;  %486 = vmatpush.bf16.msra.mxu2 %v1756_v5 }
  0x63   : > { %501 = vperm.xlu1 %1335, %v378_v27   ;;  %v581_v8 = vadd.f32 %v580_v62, %v579_v63  ;;  %v1246_v62 = vld [vmem:[#allocation7 + $0x10] sm:$0xff]  ;;  %v1786_v63 = vld [vmem:[#allocation7 + $0x20] sm:$0xff] }
  0x65   : > { %1176 = vmatmul.msk.bf16.vlgmr.msra.gmra.mxu0 %vm418_vm0, %v348_v6  ;;  %v565_v6 = vunpack.c.l.bf16 %v346_v59  ;;  %v664_v59 = vunpack.c.l.b16 %v357_v58 }
  0x67   : > { %v666_v60 = vpack.c.b16 %v664_v59, %v664_v59 }
  0x69   : > { %v731_v61 = vsel %vm730_vm12, %v666_v60, 0 }
  0x6a   : > { %739 = vmatpush.bf16.msrb.mxu0 %v731_v61 }
  0x6e   : > { %740 = vmatpush.bf16.msrb.mxu0 %v1246_v62 }
  0x72   : > { %825 = vmatpush.bf16.msra.mxu0 %v1732_v0 }
  0x75   : > { %1206 = vmatmul.msk.bf16.vlgmr.msrb.gmra.mxu0 %vm723_vm13, %v1786_v63 }
  0x76   : > { %826 = vmatpush.bf16.msra.mxu0 %v1736_v1 }
  0x7a   : > { %827 = vmatpush.bf16.msra.mxu0 %v1741_v2 }
  0x7e   : > { %828 = vmatpush.bf16.msra.mxu0 %v1746_v3 }
  0x82   : > { %829 = vmatpush.bf16.msra.mxu0 %v1751_v4 }
  0x86   : > { %830 = vmatpush.bf16.msra.mxu0 %v1756_v5 }
  0xc3   : > { %v439_v16 = vpop.permute.xlu0 %438 }
  0xcb   : > { %v444_v19 = vpop.permute.xlu0 %443 }
  0xe2   : > { %v431_v11 = vpop.f32.mrf.mxu0 }
  0xe3   : > { %v435_v12 = vpack.c.bf16 %v431_v11, %v431_v11  ;;  %v583_v11 = vadd.f32 %v582_v7, %v581_v8  ;;  %v360_v7 = vld [vmem:[#allocation7 + $0x28] sm:$0x3]  ;;  %v497_v8 = vpop.permute.xlu0 %496 }
  0xe5   : > { %v457_v13 = vsel %vm455_vm1, %v435_v12, 0  ;;  %v586_v12 = vsel %vm418_vm0, %v565_v6, 0.0 }
  0xe6   : > { %466 = vmatpush.bf16.msra.mxu1 %v457_v13  ;;  %v585_v13 = vadd.f32 %v584_v10, %v583_v11 }
  0xe9   : > { %1181 = vmatmul.msk.bf16.vlgmr.msra.gmra.mxu1 %vm451_vm2, %v1244_v14  ;;  %v588_v14 = vsel %vm418_vm0, %v566_v9, 0.0 }
  0xea   : > { %v433_v15 = vpop.f32.mrf.mxu0 }
  0xeb   : > { %v587_v15 = vadd.f32 %v586_v12, %v585_v13  ;;  %v719_v13 = vunpack.c.l.b16 %v360_v7 }
 0x166   : > { %v468_v17 = vpop.f32.mrf.mxu1 }
 0x167   : > { %v469_v18 = vadd.f32 %v468_v17, %v439_v16  ;;  %v589_v16 = vadd.f32 %v588_v14, %v587_v15 }
 0x169   : > { %v473_v22 = vmax.f32 %v469_v18, 0.0  ;;  %v590_v17 = vrot.slane %v589_v16, 4 }
 0x16b   : > { %v591_v18 = vadd.f32 %v590_v17, %v589_v16  ;;  %v1795_v16 = vpack.c.b16 %v719_v13, %v719_v13  ;;  %v1800_v17 = vld [vmem:[#allocation6] sm:$0xff] }
 0x16d   : > { %1207 = vmatmul.msk.bf16.gmra.mxu0 %vm723_vm13, %v1795_v16 }
 0x16e   : > { %v470_v20 = vpop.f32.mrf.mxu1 }
 0x16f   : > { %v471_v21 = vadd.f32 %v470_v20, %v444_v19  ;;  %v611_v19 = vpop.permute.xlu2 %610  ;;  %v592_v20 = vrot.slane %v591_v18, 2 }
 0x171   : > { %v474_v23 = vmax.f32 %v471_v21, 0.0  ;;  %v599_v21 = vpop.permute.xlu1 %598 }
 0x173   : > { %v475_v24 = vpack.c.bf16 %v474_v23, %v473_v22  ;;  %v593_v22 = vadd.f32 %v592_v20, %v591_v18 }
 0x175   : > { %1182 = vmatmul.msk.bf16.vlgmr.msra.gmra.mxu2 %vm418_vm0, %v475_v24  ;;  %v594_v23 = vrot.slane %v593_v22, 1 }
 0x177   : > { %v595_v24 = vadd.f32 %v594_v23, %v593_v22  ;;  %v616_v27 = vpop.permute.xlu2 %615 }
 0x179   : > { %v606_v25 = vmul.f32 %v599_v21, %v595_v24  ;;  %v604_v26 = vpop.permute.xlu1 %603 }
 0x17a   : > { %v607_v29 = vmul.f32 %v604_v26, %v595_v24 }
 0x17b   : > { %v618_v28 = vadd.f32 %v611_v19, %v606_v25 }
 0x181   : > { %v502_v9 = vpop.permute.xlu1 %501 }
 0x1f8   : > { %v488_v30 = vpop.f32.mrf.mxu2 }
 0x200   : > { %v490_v31 = vpop.f32.mrf.mxu2 }
 0x201   : > { %v493_v32 = vpack.c.bf16 %v490_v31, %v488_v30  ;;  %v1193_v30 = vmul.f32 -1.442695, %v618_v28  ;;  %v619_v31 = vadd.f32 %v616_v27, %v607_v29 }
 0x203   : > { %520 = vmatpush.bf16.msra.mxu3 %v493_v32  ;;  %1340 = vpow2.f32 %v1193_v30  ;;  %v1194_v32 = vmul.f32 -1.442695, %v619_v31 }
 0x205   : > { %1342 = vpow2.f32 %v1194_v32 }
 0x206   : > { %1187 = vmatmul.msk.bf16.vlgmr.msra.gmra.mxu3 %vm509_vm3, %v1245_v33 }
 0x209   : > { %v1341_v33 = vpop.eup %1340 }
 0x20a   : > { %v626_v34 = vadd.f32 1.0, %v1341_v33 }
 0x20b   : > { %v1343_v35 = vpop.eup %1342 }
 0x20c   : > { %v627_v36 = vadd.f32 1.0, %v1343_v35  ;;  %1344 = vrcp.f32 %v626_v34  ;;  %v639_v45 = vand.u32 2147483648, %v626_v34  ;;  %vm633_vm4 = vweird.f32 %v626_v34 }
 0x20d   : > { %v637_v48 = vand.u32 2147483647, %v626_v34 }
 0x20e   : > { %1346 = vrcp.f32 %v627_v36  ;;  %v654_v46 = vand.u32 2147483648, %v627_v36  ;;  %v640_v49 = vor.u32 1.1754944e-38, %v639_v45  ;;  %vm648_vm7 = vweird.f32 %v627_v36 }
 0x20f   : > { %vm638_vm9 = vcmp.eq.f32.partialorder %v637_v48, 8.507059e+37  ;;  %v652_v52 = vand.u32 2147483647, %v627_v36 }
 0x210   : > { %v655_v53 = vor.u32 1.1754944e-38, %v654_v46 }
 0x211   : > { %vm653_vm11 = vcmp.eq.f32.partialorder %v652_v52, 8.507059e+37  ;;  %v1248_v52 = vld [vmem:[#allocation7 + $0x40] sm:$0xff] }
 0x212   : > { %v1345_v37 = vpop.eup %1344 }
 0x213   : > { %v629_v39 = vmul.f32 %v1345_v37, %v626_v34  ;;  %vm634_vm5 = vweird.f32 %v1345_v37 }
 0x214   : > { %v1347_v38 = vpop.eup %1346  ;;  %vm635_vm6 = vmor %vm633_vm4, %vm634_vm5 }
 0x215   : > { %v644_v40 = vmul.f32 %v1347_v38, %v627_v36  ;;  %v630_v41 = vsub.f32 1.0, %v629_v39  ;;  %vm649_vm8 = vweird.f32 %v1347_v38 }
 0x216   : > { %vm650_vm10 = vmor %vm648_vm7, %vm649_vm8 }
 0x217   : > { %v645_v42 = vsub.f32 1.0, %v644_v40  ;;  %v631_v43 = vmul.f32 %v1345_v37, %v630_v41  ;;  %v361_v40 = vld [vmem:[#allocation7 + $0x30] sm:$0xf] }
 0x219   : > { %v646_v44 = vmul.f32 %v1347_v38, %v645_v42  ;;  %v632_v47 = vadd.f32 %v1345_v37, %v631_v43 }
 0x21b   : > { %v647_v50 = vadd.f32 %v1347_v38, %v646_v44  ;;  %v636_v51 = vsel %vm635_vm6, %v1345_v37, %v632_v47 }
 0x21c   : > { %v641_v54 = vsel %vm638_vm9, %v640_v49, %v636_v51  ;;  %v362_v51 = vld [vmem:[#allocation7 + $0x34] sm:$0xf] }
 0x21d   : > { %v651_v55 = vsel %vm650_vm10, %v1347_v38, %v647_v50 }
 0x21e   : > { %v656_v56 = vsel %vm653_vm11, %v655_v53, %v651_v55 }
 0x21f   : > { %v658_v57 = vpack.c.bf16 %v656_v56, %v641_v54 }
 0x221   : > { %680 = vmatpush.bf16.msrb.mxu3 %v658_v57 }
 0x224   : > { %1199 = vmatmul.msk.bf16.vlgmr.msrb.gmra.mxu3 %vm509_vm3, %v1246_v62 }
 0x234   : > { %1200 = vmatmul.msk.bf16.gmra.mxu3 %vm509_vm3, %v666_v60 }
 0x289   : > { %v522_v6 = vpop.f32.mrf.mxu3 }
 0x28a   : > { %v523_v11 = vadd.f32 %v522_v6, %v497_v8 }
 0x291   : > { %v524_v10 = vpop.f32.mrf.mxu3 }
 0x292   : > { %v525_v12 = vadd.f32 %v524_v10, %v502_v9 }
 0x294   : > { %v527_v14 = vpack.c.bf16 %v525_v12, %v523_v11  ;;  %v366_v12 = vld [vmem:[#allocation7 + $0x48] sm:$0xf] }
 0x296   : > { %v537_v15 = vsel %vm418_vm0, %v527_v14, 0 }
 0x297   : > { %546 = vmatpush.bf16.xpose.msrb.mxu1 %v537_v15  ;;  %v940_v15 = vsel %vm455_vm1, %v366_v12, 0 }
 0x29e   : > { %1192 = vmatmul.msk.bf16.vlgmr.msrb.gmra.mxu1 %vm418_vm0, %v1800_v17 }
 0x29f   : > { %701 = vmatpush.bf16.msra.mxu1 %v1732_v0  ;;  %v742_v0 = vpop.f32.mrf.mxu0 }
 0x2a3   : > { %702 = vmatpush.bf16.msra.mxu1 %v1736_v1 }
 0x2a7   : > { %703 = vmatpush.bf16.msra.mxu1 %v1741_v2  ;;  %v744_v18 = vpop.f32.mrf.mxu0 }
 0x2ab   : > { %704 = vmatpush.bf16.msra.mxu1 %v1746_v3  ;;  %v751_v3 = vpack.c.bf16 %v744_v18, %v742_v0  ;;  %v363_v18 = vld [vmem:[#allocation7 + $0x38] sm:$0xf] }
 0x2af   : > { %705 = vmatpush.bf16.msra.mxu1 %v1751_v4  ;;  %v747_v19 = vpop.f32.mrf.mxu0 }
 0x2b0   : > { %v752_v4 = vpack.c.bf16 %v747_v19, %v747_v19 }
 0x2b2   : > { %v838_v50 = vsel %vm730_vm12, %v752_v4, 0 }
 0x2b3   : > { %706 = vmatpush.bf16.msra.mxu1 %v1756_v5  ;;  %v682_v5 = vpop.f32.mrf.mxu3 }
 0x2b4   : > { %v691_v31 = vmul.f32 %v682_v5, %v682_v5 }
 0x2b6   : > { %1201 = vmatmul.msk.bf16.vlgmr.msra.gmra.mxu1 %vm418_vm0, %v658_v57 }
 0x2b7   : > { %v749_v1 = vpop.f32.mrf.mxu0 }
 0x2bb   : > { %v684_v27 = vpop.f32.mrf.mxu3 }
 0x2bc   : > { %v692_v32 = vmul.f32 %v684_v27, %v684_v27 }
 0x2be   : > { %v694_v35 = vpack.c.bf16 %v692_v32, %v691_v31 }
 0x2c3   : > { %v687_v28 = vpop.f32.mrf.mxu3 }
 0x2c4   : > { %v693_v29 = vmul.f32 %v687_v28, %v687_v28 }
 0x2c6   : > { %v695_v30 = vpack.c.bf16 %v693_v29, %v693_v29  ;;  %v1250_v29 = vld [vmem:[#allocation7 + $0x58] sm:$0xff] }
 0x2c8   : > { %v805_v34 = vsel %vm730_vm12, %v695_v30, 0  ;;  %v1249_v30 = vld [vmem:[#allocation7 + $0x50] sm:$0xff] }
 0x2c9   : > { %813 = vmatpush.bf16.msrb.mxu1 %v805_v34 }
 0x2cb   : > { %v689_v33 = vpop.f32.mrf.mxu3 }
 0x2cc   : > { %v1338_v33 = vld [vmem:[#allocation9 + $0x48] ss:$0 sm:$0xff] }
 0x2cd   : > { %814 = vmatpush.bf16.msrb.mxu1 %v694_v35 }
 0x2d0   : > { %1211 = vmatmul.msk.bf16.vlgmr.msrb.gmra.mxu1 %vm723_vm13, %v361_v40 }
 0x31b   : > { %v548_v20 = vpop.f32.mrf.mxu1 }
 0x31c   : > { %v553_v22 = vmul.f32 0.16666667, %v548_v20 }
 0x323   : > { %v550_v21 = vpop.f32.mrf.mxu1 }
 0x324   : > { %v554_v23 = vmul.f32 0.16666667, %v550_v21 }
 0x326   : > { %v934_v24 = vpack.c.bf16 %v554_v23, %v553_v22 }
 0x333   : > { %v708_v25 = vpop.f32.mrf.mxu1 }
 0x33b   : > { %v710_v26 = vpop.f32.mrf.mxu1 }
 0x33c   : > { %v713_v2 = vpack.c.bf16 %v710_v26, %v708_v25  ;;  %v1337_v25 = vld [vmem:[#allocation9 + $0x40] ss:$0 sm:$0xff] }
 0x33e   : > { %766 = vmatpush.bf16.msrb.mxu2 %v713_v2  ;;  %1212 = vmatmul.msk.bf16.vlgmr.msra.gmra.mxu0 %vm418_vm0, %v713_v2 }
 0x341   : > { %1208 = vmatmul.msk.bf16.vlgmr.msrb.gmra.mxu2 %vm509_vm3, %v751_v3 }
 0x34d   : > { %v816_v53 = vpop.f32.mrf.mxu1 }
 0x351   : > { %1209 = vmatmul.msk.bf16.gmra.mxu2 %vm509_vm3, %v752_v4 }
 0x355   : > { %v818_v54 = vpop.f32.mrf.mxu1 }
 0x3bb   : > { %v832_v36 = vpop.f32.mrf.mxu0 }
 0x3c3   : > { %v834_v37 = vpop.f32.mrf.mxu0 }
 0x3c4   : > { %v837_v38 = vpack.c.bf16 %v834_v37, %v832_v36  ;;  %v768_v39 = vpop.f32.mrf.mxu2 }
 0x3c5   : > { %v777_v47 = vmul.f32 %v768_v39, %v682_v5 }
 0x3c6   : > { %873 = vmatpush.bf16.msra.mxu2 %v837_v38 }
 0x3cc   : > { %v770_v41 = vpop.f32.mrf.mxu2 }
 0x3cd   : > { %v778_v45 = vmul.f32 %v770_v41, %v684_v27 }
 0x3cf   : > { %v780_v48 = vpack.c.bf16 %v778_v45, %v777_v47 }
 0x3d4   : > { %v773_v42 = vpop.f32.mrf.mxu2 }
 0x3d5   : > { %v779_v43 = vmul.f32 %v773_v42, %v687_v28  ;;  %v1339_v42 = vld [vmem:[#allocation9 + $0x50] ss:$0 sm:$0xff] }
 0x3d7   : > { %v781_v44 = vpack.c.bf16 %v779_v43, %v779_v43 }
 0x3d9   : > { %v786_v46 = vsel %vm730_vm12, %v781_v44, 0 }
 0x3da   : > { %794 = vmatpush.bf16.msra.mxu3 %v786_v46 }
 0x3dc   : > { %v775_v49 = vpop.f32.mrf.mxu2 }
 0x3de   : > { %795 = vmatpush.bf16.msra.mxu3 %v780_v48 }
 0x3e1   : > { %1210 = vmatmul.msk.bf16.vlgmr.msra.gmra.mxu3 %vm723_vm13, %v362_v51 }
 0x3e2   : > { %846 = vmatpush.bf16.msrb.mxu3 %v838_v50 }
 0x3e6   : > { %847 = vmatpush.bf16.msrb.mxu3 %v751_v3 }
 0x3ea   : > { %972 = vmatpush.bf16.msra.mxu3 %v1248_v52 }
 0x3f1   : > { %1213 = vmatmul.msk.bf16.vlgmr.msrb.gmra.mxu3 %vm723_vm13, %v1786_v63 }
 0x401   : > { %1214 = vmatmul.msk.bf16.gmra.mxu3 %vm723_vm13, %v1795_v16 }
 0x411   : > { %1224 = vmatmul.msk.bf16.vlgmr.msra.gmra.mxu3 %vm509_vm3, %v934_v24 }
 0x464   : > { %v797_v55 = vpop.f32.mrf.mxu3 }
 0x465   : > { %v817_v56 = vadd.f32 %v816_v53, %v797_v55 }
 0x46c   : > { %v799_v57 = vpop.f32.mrf.mxu3 }
 0x474   : > { %v849_v58 = vpop.f32.mrf.mxu3 }
 0x47c   : > { %v851_v59 = vpop.f32.mrf.mxu3 }
 0x47d   : > { %v858_v60 = vpack.c.bf16 %v851_v59, %v849_v58 }
 0x47f   : > { %1215 = vmatmul.msk.bf16.vlgmr.msra.gmra.mxu2 %vm509_vm3, %v858_v60 }
 0x484   : > { %v854_v61 = vpop.f32.mrf.mxu3 }
 0x485   : > { %v859_v62 = vpack.c.bf16 %v854_v61, %v854_v61 }
 0x48c   : > { %v856_v6 = vpop.f32.mrf.mxu3 }
 0x48f   : > { %1216 = vmatmul.msk.bf16.gmra.mxu2 %vm509_vm3, %v859_v62 }
 0x494   : > { %v974_v31 = vpop.f32.mrf.mxu3 }
 0x49c   : > { %v976_v34 = vpop.f32.mrf.mxu3 }
 0x502   : > { %v875_v63 = vpop.f32.mrf.mxu2 }
 0x503   : > { %v884_v14 = vmul.f32 %v875_v63, %v682_v5 }
 0x50a   : > { %v877_v7 = vpop.f32.mrf.mxu2 }
 0x50b   : > { %v885_v11 = vmul.f32 %v877_v7, %v684_v27 }
 0x50d   : > { %v887_v16 = vpack.c.bf16 %v885_v11, %v884_v14 }
 0x512   : > { %v880_v8 = vpop.f32.mrf.mxu2 }
 0x513   : > { %v886_v9 = vmul.f32 %v880_v8, %v687_v28 }
 0x515   : > { %v888_v10 = vpack.c.bf16 %v886_v9, %v886_v9 }
 0x517   : > { %v893_v13 = vsel %vm730_vm12, %v888_v10, 0 }
 0x518   : > { %901 = vmatpush.bf16.msra.mxu1 %v893_v13 }
 0x51a   : > { %v882_v0 = vpop.f32.mrf.mxu2 }
 0x51c   : > { %902 = vmatpush.bf16.msra.mxu1 %v887_v16 }
 0x51f   : > { %1217 = vmatmul.msk.bf16.vlgmr.msra.gmra.mxu1 %vm723_vm13, %v363_v18 }
 0x520   : > { %949 = vmatpush.bf16.msrb.mxu1 %v940_v15 }
 0x59c   : > { %v904_v19 = vpop.f32.mrf.mxu1 }
 0x59d   : > { %v908_v20 = vadd.f32 %v904_v19, %v817_v56 }
 0x59f   : > { %v909_v1 = vpack.c.bf16 %v908_v20, %v908_v20 }
 0x5a1   : > { %v911_v21 = vsel %vm418_vm0, %v909_v1, 0 }
 0x5a2   : > { %920 = vmatpush.bf16.xpose.msrb.mxu0 %v911_v21 }
 0x5a4   : > { %v906_v22 = vpop.f32.mrf.mxu1 }
 0x5a9   : > { %1218 = vmatmul.msk.bf16.vlgmr.msrb.gmra.mxu0 %vm418_vm0, %v1800_v17 }
 0x5aa   : > { %1008 = vmatpush.bf16.msra.mxu0 %v1250_v29 }
 0x5ae   : > { %1009 = vmatpush.bf16.msra.mxu0 %v1249_v30 }
 0x626   : > { %v922_v23 = vpop.f32.mrf.mxu0 }
 0x627   : > { %v927_v24 = vmul.f32 0.16666667, %v922_v23 }
 0x629   : > { %v930_v2 = vadd.f32 %v1337_v25, %v927_v24 }
 0x62b   : > { %v932_v5 = vmax.f32 %v930_v2, 0.0 }
 0x62e   : > { %v924_v26 = vpop.f32.mrf.mxu0 }
 0x62f   : > { %v928_v3 = vmul.f32 0.16666667, %v924_v26 }
 0x631   : > { %v931_v4 = vadd.f32 %v1337_v25, %v928_v3 }
 0x633   : > { %v933_v27 = vmax.f32 %v931_v4, 0.0 }
 0x635   : > { %v935_v28 = vpack.c.bf16 %v933_v27, %v932_v5 }
 0x637   : > { %1219 = vmatmul.msk.bf16.vlgmr.msrb.gmra.mxu1 %vm451_vm2, %v935_v28 }
 0x6b4   : > { %v951_v17 = vpop.f32.mrf.mxu1 }
 0x6b5   : > { %v975_v32 = vadd.f32 %v974_v31, %v951_v17 }
 0x6b7   : > { %v980_v36 = vadd.f32 %v1338_v33, %v975_v32 }
 0x6b9   : > { %v982_v39 = vmax.f32 %v980_v36, 0.0 }
 0x6bc   : > { %v953_v35 = vpop.f32.mrf.mxu1 }
 0x6bd   : > { %v977_v37 = vadd.f32 %v976_v34, %v953_v35 }
 0x6bf   : > { %v981_v38 = vadd.f32 %v1338_v33, %v977_v37 }
 0x6c1   : > { %v983_v40 = vmax.f32 %v981_v38, 0.0 }
 0x6c3   : > { %v984_v41 = vpack.c.bf16 %v983_v40, %v982_v39 }
 0x6c5   : > { %1233 = vmatmul.msk.bf16.vlgmr.msra.gmra.mxu0 %vm998_vm14, %v984_v41 }
 0x742   : > { %v1011_v43 = vpop.f32.mrf.mxu0 }
 0x743   : > { %v1012_v44 = vadd.f32 %v1339_v42, %v1011_v43 }
 0x745   : > { %1016 = vst [vmem:[%s334_s24] sm:$0xff] %v1012_v44 }
 0x74a   : > { %v1013_v45 = vpop.f32.mrf.mxu0 }
 0x74b   : > { %v1014_v46 = vadd.f32 %v1339_v42, %v1013_v45 }
 0x74d   : > { %1017 = vst [vmem:[%s334_s24 + $0x8] sm:$0xff] %v1014_v46 }
 0x74e PF: > { %p19_p4 = scmp.ge.s32.totalorder %s1649_s25, 4   ;;  %s1868_s18 = smov %s1536_s19 }
 0x74f   : > { %s1869_s19 = smov %s1540_s20  ;;  %s1870_s20 = smov %s1659_s29 }
 0x750   : > { %s1871_s21 = smov %s1649_s25  ;;  %21 = sbr.rel (!%p19_p4) target bundleno = 9 (0x9), region = 105 }
 0x755   :  { %1039 = vsyncpa [#allocation3], 1 }
 0x756   :  { %1041 = vsyncpa [#allocation3 + $0x1], 1 }
 0x757   :  { %1042 = vsyncpa [#allocation5], 1 }
 0x758   :  { %1044 = vsyncpa [#allocation5 + $0x1], 1 }
 0x759   :  { %1045 = vsyncpa [#allocation8], 1 }

</bundles_post_ra>
